<compile_context>
chip_gen: v5e
topology: v5e:2x2
jax: 0.10.0
libtpu: 0.0.40
codegen_flags: <defaults>
</compile_context>

<pallas_src>
import functools
import math

import jax
import jax.numpy as jnp
from jax.experimental import pallas as pl
from jax.experimental.pallas import tpu as pltpu


def _cdiv(a, b):
    return (a + b - 1) // b


def _round_up(n, m):
    return ((n + m - 1) // m) * m


def _modulate_kernel(x_ref, sb_ref, o_ref, *, compute_dtype):
    # x_ref:  (1, Ct, HWt)  streamed activation tile
    # sb_ref: (1, Ct, 2)    packed [scale, bias] per channel for this batch elem
    # o_ref:  (1, Ct, HWt)
    sb = sb_ref[...].astype(compute_dtype)
    s = sb[:, :, 0:1]
    b = sb[:, :, 1:2]
    x = x_ref[...].astype(compute_dtype)
    o_ref[...] = (x * s + b).astype(o_ref.dtype)


def _hw_profile():
    """Return (per-x-tile VMEM byte budget, ok to use native bf16 VALU)."""
    try:
        kind = jax.devices()[0].device_kind.lower()
    except Exception:
        kind = ""
    fast = ("v6" in kind) or ("v7" in kind)
    # v6e / v7x: 32 MiB default scoped VMEM -> 4 MiB x-tile (16 MiB in+out, dbl-buffered).
    # v5e / unknown: 16 MiB default scoped VMEM -> 2 MiB x-tile (8 MiB).
    return (4 if fast else 2) * 1024 * 1024, fast


def generator_modulation(x, style, w_scale, b_scale, w_bias, b_bias,
                         *, block_c=None, block_hw=None,
                         min_pallas_bytes=1 << 18):
    """StyleGAN2 GeneratorModulation forward (2-D style branch).

    x:      (B, C, H, W)  NCHW activations (any float dtype; dtype preserved)
    style:  (B, S)        style vectors
    w_*:    (C, S)        EqualLinear weights;  b_*: (C,) biases
    """
    B, C, H, W = x.shape
    S = style.shape[1]
    HW = H * W
    out_dtype = x.dtype
    itemsize = jnp.dtype(out_dtype).itemsize
    eq = 1.0 / math.sqrt(S)  # EqualLinear equalized-lr scale, lr_mul = 1

    # ---- Hoisted EqualLinear: one (B,S) x (S,2C) matmul, eq folded into W ----
    w_cat = jnp.concatenate([w_scale, w_bias], axis=0).astype(jnp.float32)   # (2C, S)
    b_cat = jnp.concatenate([b_scale, b_bias], axis=0).astype(jnp.float32)   # (2C,)
    sb_flat = style.astype(jnp.float32) @ (w_cat.T * eq) + b_cat             # (B, 2C)
    s_vec = sb_flat[:, :C]                                                   # (B, C)
    b_vec = sb_flat[:, C:]                                                   # (B, C)

    # ---- Small-activation fallback: XLA fuses this at roofline already ------
    if B * C * HW * itemsize < min_pallas_bytes:
        out = (x.astype(jnp.float32) * s_vec[:, :, None, None]
               + b_vec[:, :, None, None]).astype(out_dtype)
        return out

    budget, fast_gen = _hw_profile()
    # Native bf16 FMA on v6e/v7x (bf16 VALU); f32 compute on v5e / for f32 inputs.
    if out_dtype == jnp.bfloat16 and fast_gen:
        compute_dtype = jnp.bfloat16
    else:
        compute_dtype = jnp.float32

    # Sublane packing of the streamed dtype: 8 (4B) / 16 (2B) / 32 (1B).
    pack = {4: 8, 2: 16, 1: 32}.get(itemsize, 8)
    max_c = block_c if block_c is not None else 256
    assert max_c % pack == 0, f"block_c must be a multiple of {pack} for dtype {out_dtype}"
    if block_hw is not None:
        assert block_hw % 128 == 0

    # ---- Tile selection: NO padding / slicing of x; Pallas masks ragged blocks
    Ct = C if C <= max_c else max_c          # full-extent C block is always layout-legal
    full_row_bytes = Ct * HW * itemsize
    if full_row_bytes <= budget and (block_hw is None or HW <= block_hw):
        # Full spatial extent: one contiguous DMA per (b, ci) block, no hw grid axis.
        HWt = HW
        split_hw = False
    else:
        HWt = max(128, (budget // (Ct * itemsize)) // 128 * 128)
        if block_hw is not None:
            HWt = min(HWt, block_hw)
        HWt = min(HWt, _round_up(HW, 128))
        split_hw = True

    n_c = _cdiv(C, Ct)
    n_hw = _cdiv(HW, HWt) if split_hw else 1

    # Expose >= 2 blocks so both TensorCores get work on megacore parts (v7x).
    if B * n_c * n_hw < 2:
        if not split_hw and HW >= 2 * 128:
            split_hw = True
            HWt = _round_up(_cdiv(HW, 2), 128)
            n_hw = _cdiv(HW, HWt)
        elif C >= 2 * pack:
            Ct = _round_up(_cdiv(C, 2), pack)
            n_c = _cdiv(C, Ct)

    x_flat = x.reshape(B, C, HW)                                   # view, no copy
    sb = jnp.stack([s_vec, b_vec], axis=-1).astype(compute_dtype)  # (B, C, 2)

    if split_hw:
        grid = (B, n_c, n_hw)
        x_spec = pl.BlockSpec((1, Ct, HWt), lambda b, ci, hi: (b, ci, hi))
        sb_spec = pl.BlockSpec((1, Ct, 2), lambda b, ci, hi: (b, ci, 0))
        out_spec = pl.BlockSpec((1, Ct, HWt), lambda b, ci, hi: (b, ci, hi))
    else:
        grid = (B, n_c)
        x_spec = pl.BlockSpec((1, Ct, HW), lambda b, ci: (b, ci, 0))
        sb_spec = pl.BlockSpec((1, Ct, 2), lambda b, ci: (b, ci, 0))
        out_spec = pl.BlockSpec((1, Ct, HW), lambda b, ci: (b, ci, 0))

    cost = pl.CostEstimate(
        flops=2 * B * C * HW,
        transcendentals=0,
        bytes_accessed=2 * B * C * HW * itemsize
        + B * C * 2 * jnp.dtype(compute_dtype).itemsize,
    )

    out_flat = pl.pallas_call(
        functools.partial(_modulate_kernel, compute_dtype=compute_dtype),
        out_shape=jax.ShapeDtypeStruct((B, C, HW), out_dtype),
        grid_spec=pltpu.PrefetchScalarGridSpec(
            num_scalar_prefetch=0,
            grid=grid,
            in_specs=[x_spec, sb_spec],
            out_specs=out_spec,
        ),
        compiler_params=pltpu.CompilerParams(
            dimension_semantics=("parallel",) * len(grid),
        ),
        cost_estimate=cost,
    )(x_flat, sb)

    return out_flat.reshape(B, C, H, W)


def _reference(x, style, w_scale, b_scale, w_bias, b_bias):
    S = style.shape[1]
    eq = 1.0 / math.sqrt(S)
    x32 = x.astype(jnp.float32)
    st32 = style.astype(jnp.float32)
    s_vec = st32 @ w_scale.T * eq + b_scale   # (B, C)
    b_vec = st32 @ w_bias.T * eq + b_bias     # (B, C)
    return x32 * s_vec[:, :, None, None] + b_vec[:, :, None, None]


if __name__ == "__main__":
    key = jax.random.PRNGKey(0)

    # ---- Case 1: small f32 shapes consistent with the module (forced Pallas path)
    B, C, H, W, S = 2, 4, 16, 16, 8
    kx, ks, kws, kwb, kbs, kbb, k2 = jax.random.split(key, 7)
    x = jax.random.normal(kx, (B, C, H, W), dtype=jnp.float32)
    style = jax.random.normal(ks, (B, S), dtype=jnp.float32)
    w_scale = jax.random.normal(kws, (C, S), dtype=jnp.float32)
    w_bias = jax.random.normal(kwb, (C, S), dtype=jnp.float32)
    b_scale = 0.1 * jax.random.normal(kbs, (C,), dtype=jnp.float32)
    b_bias = 0.1 * jax.random.normal(kbb, (C,), dtype=jnp.float32)

    out = generator_modulation(x, style, w_scale, b_scale, w_bias, b_bias,
                               min_pallas_bytes=0)  # force the Pallas path
    out = jax.block_until_ready(out)
    ref = _reference(x, style, w_scale, b_scale, w_bias, b_bias)
    assert out.shape == (B, C, H, W)
    assert out.dtype == x.dtype
    assert jnp.allclose(out, ref, atol=1e-5, rtol=1e-5), "f32 mismatch vs reference"

    # ---- Case 2: bf16 input, non-128-aligned spatial extent (dtype preserved) ----
    B2, C2, H2, W2 = 2, 32, 24, 24
    k2x, k2s = jax.random.split(k2)
    x2 = jax.random.normal(k2x, (B2, C2, H2, W2), dtype=jnp.float32).astype(jnp.bfloat16)
    style2 = jax.random.normal(k2s, (B2, S), dtype=jnp.float32)
    kws2, kwb2, kbs2, kbb2 = jax.random.split(jax.random.PRNGKey(1), 4)
    w_scale2 = jax.random.normal(kws2, (C2, S), dtype=jnp.float32)
    w_bias2 = jax.random.normal(kwb2, (C2, S), dtype=jnp.float32)
    b_scale2 = 0.1 * jax.random.normal(kbs2, (C2,), dtype=jnp.float32)
    b_bias2 = 0.1 * jax.random.normal(kbb2, (C2,), dtype=jnp.float32)

    out2 = generator_modulation(x2, style2, w_scale2, b_scale2, w_bias2, b_bias2,
                                min_pallas_bytes=0)
    out2 = jax.block_until_ready(out2)
    ref2 = _reference(x2, style2, w_scale2, b_scale2, w_bias2, b_bias2)
    assert out2.shape == (B2, C2, H2, W2)
    assert out2.dtype == jnp.bfloat16
    assert jnp.allclose(out2.astype(jnp.float32), ref2, atol=0.25, rtol=5e-2), \
        "bf16 mismatch vs reference"

    print("KERNEL_OK")
</pallas_src>

<mosaic_0001>
module attributes {stable_mosaic.version = 11 : i64} {
  func.func @_modulate_kernel(%arg0: i32, %arg1: i32, %arg2: memref<1x4x256xf32, #tpu.memory_space<vmem>>, %arg3: memref<1x4x2xf32, #tpu.memory_space<vmem>>, %arg4: memref<1x4x256xf32, #tpu.memory_space<vmem>>) attributes {dimension_semantics = [#tpu.dimension_semantics<parallel>, #tpu.dimension_semantics<parallel>], iteration_bounds = array<i64: 2, 1>, scalar_prefetch = 0 : i64, scratch_operands = 0 : i64, tpu.core_type = #tpu.core_type<tc>, window_params = [{transform_indices = @transform_0, window_bounds = array<i64: 1, 4, 256>}, {transform_indices = @transform_1, window_bounds = array<i64: 1, 4, 2>}, {transform_indices = @transform_2, window_bounds = array<i64: 1, 4, 256>}]} {
    %c0 = arith.constant 0 : index
    %c0_0 = arith.constant 0 : index
    %c0_1 = arith.constant 0 : index
    %0 = vector.load %arg3[%c0, %c0_0, %c0_1] : memref<1x4x2xf32, #tpu.memory_space<vmem>>, vector<1x4x2xf32>
    %1 = vector.extract_strided_slice %0 {offsets = [0, 0, 0], sizes = [1, 4, 1], strides = [1, 1, 1]} : vector<1x4x2xf32> to vector<1x4x1xf32>
    %2 = vector.extract_strided_slice %0 {offsets = [0, 0, 1], sizes = [1, 4, 1], strides = [1, 1, 1]} : vector<1x4x2xf32> to vector<1x4x1xf32>
    %c0_2 = arith.constant 0 : index
    %c0_3 = arith.constant 0 : index
    %c0_4 = arith.constant 0 : index
    %3 = vector.load %arg2[%c0_2, %c0_3, %c0_4] : memref<1x4x256xf32, #tpu.memory_space<vmem>>, vector<1x4x256xf32>
    %4 = vector.broadcast %1 : vector<1x4x1xf32> to vector<1x4x256xf32>
    %5 = arith.mulf %3, %4 : vector<1x4x256xf32>
    %6 = vector.broadcast %2 : vector<1x4x1xf32> to vector<1x4x256xf32>
    %7 = arith.addf %5, %6 : vector<1x4x256xf32>
    %c0_5 = arith.constant 0 : index
    %c0_6 = arith.constant 0 : index
    %c0_7 = arith.constant 0 : index
    %8 = vector.load %arg4[%c0_5, %c0_6, %c0_7] : memref<1x4x256xf32, #tpu.memory_space<vmem>>, vector<1x4x256xf32>
    tpu.vector_store %arg4[%c0_5, %c0_6, %c0_7], %7 {strides = array<i32>} : memref<1x4x256xf32, #tpu.memory_space<vmem>>, vector<1x4x256xf32>,
    return
  }
  func.func @transform_0(%arg0: i32, %arg1: i32) -> (i32, i32, i32) {
    %c0_i32 = arith.constant 0 : i32
    %c0_i32_0 = arith.constant 0 : i32
    return %arg0, %arg1, %c0_i32 : i32, i32, i32
  }
  func.func @transform_1(%arg0: i32, %arg1: i32) -> (i32, i32, i32) {
    %c0_i32 = arith.constant 0 : i32
    %c0_i32_0 = arith.constant 0 : i32
    return %arg0, %arg1, %c0_i32 : i32, i32, i32
  }
  func.func @transform_2(%arg0: i32, %arg1: i32) -> (i32, i32, i32) {
    %c0_i32 = arith.constant 0 : i32
    %c0_i32_0 = arith.constant 0 : i32
    return %arg0, %arg1, %c0_i32 : i32, i32, i32
  }
}

</mosaic_0001>

<bundles_post_ra>
// kernel: tpu_custom_call.1
= control target key start
LH: loop header
LB: loop body
LE: loop exit
PB: predicated region body
PF: predicated region fallthrough
CT: control target
= control target key end

     0   :  { %7 = vsyncpa [#allocation3], 0  ;;  %s690_s0 = inlined_call_operand.hbm [shape: f32[2,4,256], index: 0, kind: input, shape index: {}]   ;;  %s691_s1 = inlined_call_operand.vmem [shape: f32[2,4,2], index: 1, kind: input, shape index: {}]   ;;  %s692_s2 = inlined_call_operand.hbm [shape: f32[2,4,256], index: 2, kind: output, shape index: {}]  }
   0x1   :  { %9 = vsyncpa [#allocation3 + $0x1], 0 }
   0x2   :  { %10 = vsyncpa [#allocation4], 0 }
   0x3   :  { %12 = vsyncpa [#allocation4 + $0x1], 0  ;;  %s565_s9 = smov 0   ;;  %s567_s10 = smov 0  }
   0x4   :  { %s569_s11 = smov 0   ;;  %s571_s12 = smov 0  }
   0x5   :  { %s573_s13 = smov 0   ;;  %s575_s14 = smov 0  }
   0x6 LB: > { %s348_s15 = sadd.s32 4294967295, %s545_s14   ;;  %s349_s16 = sadd.s32 4294967294, %s545_s14   ;;  %s545_s14 = sphi %s575_s14, %s18_s14   ;;  %s541_s13 = sphi %s573_s13, %s701_s13   ;;  %s537_s12 = sphi %s571_s12, %s700_s12   ;;  %s533_s11 = sphi %s569_s11, %s699_s11   ;;  %s529_s10 = sphi %s567_s10, %s698_s10   ;;  %s525_s9 = sphi %s565_s9, %s697_s9  }
   0x7   : > { %s30_s17 = sadd.s32 1, %s541_s13  ;;  %s39_s18 = sadd.s32 1, %s533_s11 }
   0x8   : > { %p32_p0 = scmp.ge.s32.totalorder %s30_s17, 2  ;;  %p46_p1 = scmp.ne.s32.totalorder %s533_s11, %s529_s10 }
   0x9   : > { %p47_p2 = scmp.eq.s32.totalorder %s545_s14, 0  ;;  %p52_p3 = scmp.ne.s32.totalorder %s529_s10, %s525_s9 }
   0xa   : > { %s703_s17 = smov (%p32_p0, %s30_s17), 0  ;;  %p53_p5 = scmp.eq.s32.totalorder %s348_s15, 0 }
   0xb   : > { %p606_p4 = por %p47_p2, %p46_p1  ;;  %s34_s20 = ssub.s32 %s541_s13, %s703_s17 }
   0xc   : > { %p106_p6 = scmp.eq.s32.totalorder %s348_s15, 1  ;;  %p37_p7 = scmp.eq.s32.totalorder %s34_s20, 0 }
   0xd   : > { %p612_p8 = por %p53_p5, %p52_p3  ;;  %p112_p10 = scmp.eq.s32.totalorder %s349_s16, 1 }
   0xe   : > { %p616_p9 = por %p106_p6, %p46_p1  ;;  %p351_p12 = scmp.ge.s32.totalorder %s545_s14, 2 }
   0xf   : > { %s621_s23 = scalar_select %p37_p7, %s533_s11, %s39_s18  }
  0x10   : > { %p623_p11 = por %p112_p10, %p52_p3  ;;  %p378_p13 = scmp.lt.s32.totalorder %s545_s14, 2 }
  0x11   : > { %s132_s25 = sand.u32 1, %s533_s11   ;;  %s364_s27 = sshll.u32 %s541_s13, 3 }
  0x12   : > { %s352_s26 = sshll.u32 %s132_s25, 3  ;;  %s143_s30 = scalar_lea.hbm %s690_s0, %s364_s27 }
  0x13   : > { %s136_s3 = scalar_lea.vmem [#allocation2], %s352_s26  ;;  %s145_s5 = sshll.u32 %s143_s30, 4  ;;  %s146_s5 = int_to_ptr.hbm [resolvable:$true] %s145_s5 }
  0x14   : > { %s147_s4 = sshll.u32 %s136_s3, 4  ;;  %p371_p0 = pnand %p378_p13, %p606_p4  ;;  %s148_s4 = int_to_ptr.vmem [resolvable:$true] %s147_s4 }
  0x15   : > { %p355_p1 = scmp.ge.s32.totalorder %s545_s14, 1  ;;  %p162_p2 = scmp.lt.s32.totalorder %s545_s14, 3 }
  0x16   : > { %s133_s6 = scalar_lea.sflag [#allocation3], %s132_s25 }
  0x17   : > { %373 = dma.hbm_to_vmem [thread:$0]  (!%p371_p0), %s146_s5, 128, %s148_s4, %s133_s6  }
  0x18   : > { %p163_p3 = pnand %p355_p1, %p162_p2 }
  0x19   : > { %s639_s7 = sand.u32 (!%p163_p3), 1, %s529_s10  }
  0x1a   : > { %166 = sbr.rel (%p163_p3) target bundleno = 170 (0xaa), region = 28  ;;  %s356_s8 = sshll.u32 (!%p163_p3), %s639_s7, 3 }
  0x1b   : > { %s169_s15 = scalar_lea.sflag (!%p163_p3), [#allocation3], %s639_s7  ;;  %s172_s16 = scalar_lea.vmem (!%p163_p3), [#allocation2], %s356_s8 }
  0x1f   : > { %516 = dma.done.wait (%p612_p8), %s169_s15, 128  }
  0x20   : > { %518 = vsyncadd (%p612_p8), %s169_s15, 4294967168  ;;  %p201_p4 = scmp.lt.s32.totalorder %s537_s12, 1  ;;  %v547_v0 = vmov 0   ;;  %v548_v2 = vmov 1   ;;  %v549_v3 = vmov 839922192  }
  0x21   : > { %431 = vset.pattern.permute.xlu0 %v547_v0  ;;  %v215_v4 = vunpack.c.l.s4 %v549_v3  ;;  %s365_s21 = sshll.u32 %s537_s12, 3  ;;  %v209_v8 = vld [vmem:[%s172_s16] sm:$0xff]  ;;  %s200_s30 = scalar_lea.vmem [#allocation5], %s356_s8 }
  0x22   : > { %s202_s18 = scalar_select %p201_p4, %s537_s12, 1 }
  0x23   : > { %v216_v6 = vunpack.c.0.s8 %v215_v4  ;;  %s244_s29 = scalar_lea.hbm %s692_s2, %s365_s21  ;;  %s246_s3 = sshll.u32 %s200_s30, 4  ;;  %s247_s3 = int_to_ptr.vmem [resolvable:$true] %s246_s3 }
  0x24   : > { %s358_s19 = sshll.u32 %s202_s18, 2  ;;  %s248_s4 = sshll.u32 %s244_s29, 4  ;;  %s249_s4 = int_to_ptr.hbm [resolvable:$true] %s248_s4 }
  0x25   : > { %s207_s26 = scalar_lea.vmem %s691_s1, %s358_s19  ;;  %s231_s5 = scalar_lea.sflag [#allocation4], %s639_s7 }
  0x26   : > { %v208_v1 = vld [vmem:[%s207_s26] sm:$0xf]  ;;  %s477_s6 = sshra.s32 %s249_s4, 4  ;;  %s483_s8 = scalar_lea.hbm %s692_s2, 16  ;;  %s478_s6 = int_to_ptr.hbm [resolvable:$true] %s477_s6 }
  0x27   : > { %212 = vperm.xlu0 %431, %v208_v1   ;;  %s479_s12 = scalar_lea.hbm %s478_s6, 8  ;;  %p484_p8 = scmp.lt.s32.totalorder %s478_s6, %s692_s2 }
  0x28   : > { %p480_p5 = scmp.ne.s32.totalorder %s478_s6, %s479_s12  ;;  %p485_p10 = scmp.lt.s32.totalorder %s483_s8, %s479_s12 }
  0x2a   : > { %p481_p6 = pnand %p480_p5, %p616_p9  ;;  %p486_p13 = por %p485_p10, %p484_p8 }
  0x2c   : > { %p482_p7 = pneg %p481_p6 }
  0x2e   : > { %p487_p0 = pnand %p486_p13, %p482_p7 }
  0x2f   : > { %432 = vset.pattern.permute.xlu0 %v548_v2 }
  0x30   : > { %221 = vperm.xlu0 %432, %v208_v1  }
  0x99   : > { %v213_v5 = vpop.permute.xlu0 %212 }
  0x9a   : > { %v217_v7 = vperm.slane %v213_v5, %v216_v6 }
  0x9c   : > { %v219_v10 = vmul.f32 %v217_v7, %v209_v8 }
  0xa2   : > { %v222_v9 = vpop.permute.xlu0 %221 }
  0xa3   : > { %v226_v11 = vperm.slane %v222_v9, %v216_v6 }
  0xa5   : > { %v228_v12 = vadd.f32 %v226_v11, %v219_v10 }
  0xa7   : > { %229 = vst [vmem:[%s200_s30] sm:$0xff] %v228_v12 }
  0xa8   : > { %490 = shalt.err (!%p487_p0)
}
  0xa9   : > { %368 = dma.vmem_to_hbm [thread:$0]  (%p616_p9), %s247_s3, 128, %s249_s4, %s231_s5  }
  0xaa PF: > { %s260_s7 = sand.u32 1, %s525_s9   ;;  %p375_p1 = pnand %p351_p12, %p623_p11 }
  0xab   : > { %s261_s20 = scalar_lea.sflag [#allocation4], %s260_s7 }
  0xac   : > { %p376_p2 = pneg %p375_p1 }
  0xae   : > { %520 = dma.done.wait (%p376_p2), %s261_s20, 128  }
  0xaf   : > { %522 = vsyncadd (%p376_p2), %s261_s20, 4294967168  ;;  %s18_s14 = sadd.s32 1, %s545_s14   ;;  %s697_s9 = smov %s529_s10 }
  0xb0   : > { %p15_p3 = scmp.ge.s32.totalorder %s18_s14, 4   ;;  %s698_s10 = smov %s533_s11 }
  0xb1   : > { %s699_s11 = smov %s621_s23  ;;  %s700_s12 = smov %s541_s13 }
  0xb2   : > { %s701_s13 = smov %s703_s17  ;;  %17 = sbr.rel (!%p15_p3) target bundleno = 6 (0x6), region = 76 }
  0xb7   :  { %267 = vsyncpa [#allocation3], 1 }
  0xb8   :  { %269 = vsyncpa [#allocation3 + $0x1], 1 }
  0xb9   :  { %270 = vsyncpa [#allocation4], 1 }
  0xba   :  { %272 = vsyncpa [#allocation4 + $0x1], 1 }

</bundles_post_ra>
